<compile_context>
chip_gen: v6e
topology: v6e:2x2x1
jax: 0.10.0
libtpu: 0.0.40
codegen_flags: <defaults>
</compile_context>

<pallas_src>
import jax
import jax.numpy as jnp
from jax import lax
from jax.experimental import pallas as pl
from jax.experimental.pallas import tpu as pltpu

BN_EPS = 1e-5


# ------------------------------ Pallas kernel ------------------------------ #

def conv_bn_relu_kernel(x_ref, w_ref, g_ref, beta_ref, o_ref):
    """Fused (M,K)x(K,Ct) bf16 matmul + batch-norm (batch stats) + ReLU."""
    # MXU: bf16 x bf16 -> f32 accumulate.
    y = jnp.dot(x_ref[...], w_ref[...], preferred_element_type=jnp.float32)

    m = y.shape[0]
    # Per-channel batch statistics.  Do the axis-0 reductions on the MXU
    # (ones(1,M) @ y) instead of cross-sublane XLU reduces -- the MXU is idle
    # during this epilogue anyway.
    ones_row = jnp.ones((1, m), jnp.float32)
    s = jnp.dot(ones_row, y, preferred_element_type=jnp.float32)        # (1, Ct)
    ss = jnp.dot(ones_row, y * y, preferred_element_type=jnp.float32)   # (1, Ct)
    inv_m = 1.0 / m
    mean = s * inv_m
    var = ss * inv_m - mean * mean          # biased variance (PyTorch training BN)
    inv_std = lax.rsqrt(var + BN_EPS)

    y_hat = (y - mean) * inv_std
    o_ref[...] = jnp.maximum(g_ref[...] * y_hat + beta_ref[...], 0.0)


def conv_bn_relu(patches_bf16, w_mat_bf16, gamma, beta, tile_n=256):
    """Gridded pallas_call: grid over Cout tiles; patch matrix stays resident."""
    M, K = patches_bf16.shape
    cout = w_mat_bf16.shape[1]
    tn = cout if cout <= tile_n else tile_n
    assert cout % tn == 0, (cout, tn)
    grid = (cout // tn,)

    return pl.pallas_call(
        conv_bn_relu_kernel,
        out_shape=jax.ShapeDtypeStruct((M, cout), jnp.float32),
        grid_spec=pltpu.PrefetchScalarGridSpec(
            num_scalar_prefetch=0,
            grid=grid,
            in_specs=[
                # Patch matrix: constant block index -> resident across grid.
                pl.BlockSpec((M, K), lambda j: (0, 0)),
                # Weight / BN params / output stream per Cout tile.
                pl.BlockSpec((K, tn), lambda j: (0, j)),
                pl.BlockSpec((1, tn), lambda j: (0, j)),
                pl.BlockSpec((1, tn), lambda j: (0, j)),
            ],
            out_specs=pl.BlockSpec((M, tn), lambda j: (0, j)),
        ),
        compiler_params=pltpu.CompilerParams(
            # Cout tiles are independent -> shard across TCs on v7x megacore.
            dimension_semantics=("parallel",),
            # Explicit, generation-safe VMEM budget (fits v7x's 64 MiB too).
            vmem_limit_bytes=32 * 1024 * 1024,
        ),
    )(patches_bf16, w_mat_bf16, gamma, beta)


# ----------------------------- plain-JAX glue ------------------------------ #

def im2col_3x3(x_nhwc, pad):
    """Extract 3x3 stride-1 patches.  Returns (N*Ho*Wo, 9*C) and spatial dims."""
    if pad:
        x_nhwc = jnp.pad(x_nhwc, ((0, 0), (pad, pad), (pad, pad), (0, 0)))
    N, H, W, C = x_nhwc.shape
    Ho, Wo = H - 2, W - 2
    cols = [x_nhwc[:, i:i + Ho, j:j + Wo, :] for i in range(3) for j in range(3)]
    patches = jnp.concatenate(cols, axis=-1)                 # (N, Ho, Wo, 9*C)
    return patches.reshape(N * Ho * Wo, 9 * C), (N, Ho, Wo)


def maxpool2(x_nhwc):
    """MaxPool2d(kernel=2, stride=2), floor mode (PyTorch default)."""
    N, H, W, C = x_nhwc.shape
    Hf, Wf = (H // 2) * 2, (W // 2) * 2
    x = x_nhwc[:, :Hf, :Wf, :]
    x = x.reshape(N, Hf // 2, 2, Wf // 2, 2, C)
    return jnp.max(x, axis=(2, 4))


def conv_layer(x_nhwc, params, pad, pool):
    w_mat, gamma, beta = params
    patches, (N, Ho, Wo) = im2col_3x3(x_nhwc, pad)
    K = patches.shape[1]
    Kp = w_mat.shape[0]
    if Kp != K:   # layer 1: K=27 padded to 32 (zero weight rows -> no effect)
        patches = jnp.pad(patches, ((0, 0), (0, Kp - K)))
    out = conv_bn_relu(patches.astype(jnp.bfloat16), w_mat, gamma, beta)
    out = out.reshape(N, Ho, Wo, -1)
    if pool:
        out = maxpool2(out)
    return out


def make_layer_params(key, cin, cout):
    """Deterministic synthetic init mimicking PyTorch shapes (Cout,Cin,3,3)."""
    k1, _ = jax.random.split(key)
    fan_in = cin * 9
    bound = 1.0 / (fan_in ** 0.5)
    w = jax.random.uniform(k1, (cout, cin, 3, 3), jnp.float32, -bound, bound)
    gamma = jnp.ones((1, cout), jnp.float32)     # BN affine init
    beta = jnp.zeros((1, cout), jnp.float32)
    # NOTE: Conv2d bias omitted -- training-mode BN cancels it exactly.
    # Reorder weight to im2col K layout: K index = (ki*3+kj)*Cin + cin
    w_mat = jnp.transpose(w, (2, 3, 1, 0)).reshape(9 * cin, cout)
    # Pad K up to a multiple of 32 (bf16 sublane packing; only layer 1 needs it).
    K = 9 * cin
    Kp = ((K + 31) // 32) * 32
    if Kp != K:
        w_mat = jnp.pad(w_mat, ((0, Kp - K), (0, 0)))
    return (w_mat.astype(jnp.bfloat16), gamma, beta)


def conv4_512_forward(x_nchw, params):
    x = jnp.transpose(x_nchw, (0, 2, 3, 1))          # NCHW -> NHWC
    x = conv_layer(x, params[0], pad=0, pool=True)   # 3   -> 64,  conv+BN+ReLU+pool
    x = conv_layer(x, params[1], pad=0, pool=True)   # 64  -> 128, conv+BN+ReLU+pool
    x = conv_layer(x, params[2], pad=1, pool=False)  # 128 -> 256, conv+BN+ReLU
    x = conv_layer(x, params[3], pad=1, pool=False)  # 256 -> 512, conv+BN+ReLU
    return jnp.transpose(x, (0, 3, 1, 2))            # NHWC -> NCHW


if __name__ == "__main__":
    key = jax.random.PRNGKey(0)
    kx, k1, k2, k3, k4 = jax.random.split(key, 5)

    # Small but consistent shape: batch=2, 3 input channels, 16x16 spatial.
    x = jax.random.normal(kx, (2, 3, 16, 16), dtype=jnp.float32)

    params = (
        make_layer_params(k1, 3, 64),
        make_layer_params(k2, 64, 128),
        make_layer_params(k3, 128, 256),
        make_layer_params(k4, 256, 512),
    )

    out = conv4_512_forward(x, params)
    out = jax.block_until_ready(out)
    assert out.shape == (2, 512, 2, 2), out.shape
    assert bool(jnp.all(jnp.isfinite(out)))
    print("KERNEL_OK")
</pallas_src>

<mosaic_0001>
module attributes {stable_mosaic.version = 11 : i64} {
  func.func @conv_bn_relu_kernel(%arg0: i32, %arg1: memref<392x32xbf16, #tpu.memory_space<vmem>>, %arg2: memref<32x64xbf16, #tpu.memory_space<vmem>>, %arg3: memref<1x64xf32, #tpu.memory_space<vmem>>, %arg4: memref<1x64xf32, #tpu.memory_space<vmem>>, %arg5: memref<392x64xf32, #tpu.memory_space<vmem>>) attributes {dimension_semantics = [#tpu.dimension_semantics<parallel>], iteration_bounds = array<i64: 1>, scalar_prefetch = 0 : i64, scratch_operands = 0 : i64, tpu.core_type = #tpu.core_type<tc>, window_params = [{pipeline_mode = #tpu.pipeline_mode<synchronous>, transform_indices = @transform_0, window_bounds = array<i64: 392, 32>}, {transform_indices = @transform_1, window_bounds = array<i64: 32, 64>}, {transform_indices = @transform_2, window_bounds = array<i64: 1, 64>}, {transform_indices = @transform_3, window_bounds = array<i64: 1, 64>}, {transform_indices = @transform_4, window_bounds = array<i64: 392, 64>}]} {
    %c0 = arith.constant 0 : index
    %c0_0 = arith.constant 0 : index
    %0 = vector.load %arg1[%c0, %c0_0] : memref<392x32xbf16, #tpu.memory_space<vmem>>, vector<392x32xbf16>
    %c0_1 = arith.constant 0 : index
    %c0_2 = arith.constant 0 : index
    %1 = vector.load %arg2[%c0_1, %c0_2] : memref<32x64xbf16, #tpu.memory_space<vmem>>, vector<32x64xbf16>
    %cst = arith.constant dense<0.000000e+00> : vector<392x64xf32>
    %2 = tpu.matmul %0, %1, %cst {dimension_numbers = #tpu.dot_dimension_numbers<[1], [0], [0], [1], [0, 0, 1, 1], [], []>} : vector<392x32xbf16>, vector<32x64xbf16>, vector<392x64xf32> -> vector<392x64xf32>
    %cst_3 = arith.constant 1.000000e+00 : f32
    %3 = vector.broadcast %cst_3 : f32 to vector<1x392xf32>
    %cst_4 = arith.constant dense<0.000000e+00> : vector<1x64xf32>
    %4 = tpu.matmul %3, %2, %cst_4 {dimension_numbers = #tpu.dot_dimension_numbers<[1], [0], [0], [1], [0, 0, 1, 1], [], []>} : vector<1x392xf32>, vector<392x64xf32>, vector<1x64xf32> -> vector<1x64xf32>
    %5 = arith.mulf %2, %2 : vector<392x64xf32>
    %cst_5 = arith.constant dense<0.000000e+00> : vector<1x64xf32>
    %6 = tpu.matmul %3, %5, %cst_5 {dimension_numbers = #tpu.dot_dimension_numbers<[1], [0], [0], [1], [0, 0, 1, 1], [], []>} : vector<1x392xf32>, vector<392x64xf32>, vector<1x64xf32> -> vector<1x64xf32>
    %cst_6 = arith.constant 0.00255102036 : f32
    %7 = vector.broadcast %cst_6 : f32 to vector<1x64xf32>
    %8 = arith.mulf %4, %7 : vector<1x64xf32>
    %cst_7 = arith.constant 0.00255102036 : f32
    %9 = vector.broadcast %cst_7 : f32 to vector<1x64xf32>
    %10 = arith.mulf %6, %9 : vector<1x64xf32>
    %11 = arith.mulf %8, %8 : vector<1x64xf32>
    %12 = arith.subf %10, %11 : vector<1x64xf32>
    %cst_8 = arith.constant 9.99999974E-6 : f32
    %13 = vector.broadcast %cst_8 : f32 to vector<1x64xf32>
    %14 = arith.addf %12, %13 : vector<1x64xf32>
    %15 = math.rsqrt %14 : vector<1x64xf32>
    %16 = vector.broadcast %8 : vector<1x64xf32> to vector<392x64xf32>
    %17 = arith.subf %2, %16 : vector<392x64xf32>
    %18 = vector.broadcast %15 : vector<1x64xf32> to vector<392x64xf32>
    %19 = arith.mulf %17, %18 : vector<392x64xf32>
    %c0_9 = arith.constant 0 : index
    %c0_10 = arith.constant 0 : index
    %20 = vector.load %arg3[%c0_9, %c0_10] : memref<1x64xf32, #tpu.memory_space<vmem>>, vector<1x64xf32>
    %21 = vector.broadcast %20 : vector<1x64xf32> to vector<392x64xf32>
    %22 = arith.mulf %21, %19 : vector<392x64xf32>
    %c0_11 = arith.constant 0 : index
    %c0_12 = arith.constant 0 : index
    %23 = vector.load %arg4[%c0_11, %c0_12] : memref<1x64xf32, #tpu.memory_space<vmem>>, vector<1x64xf32>
    %24 = vector.broadcast %23 : vector<1x64xf32> to vector<392x64xf32>
    %25 = arith.addf %22, %24 : vector<392x64xf32>
    %cst_13 = arith.constant 0.000000e+00 : f32
    %26 = vector.broadcast %cst_13 : f32 to vector<392x64xf32>
    %27 = arith.maximumf %25, %26 : vector<392x64xf32>
    %c0_14 = arith.constant 0 : index
    %c0_15 = arith.constant 0 : index
    %28 = vector.load %arg5[%c0_14, %c0_15] : memref<392x64xf32, #tpu.memory_space<vmem>>, vector<392x64xf32>
    tpu.vector_store %arg5[%c0_14, %c0_15], %27 {strides = array<i32>} : memref<392x64xf32, #tpu.memory_space<vmem>>, vector<392x64xf32>,
    return
  }
  func.func @transform_0(%arg0: i32) -> (i32, i32) {
    %c0_i32 = arith.constant 0 : i32
    %c0_i32_0 = arith.constant 0 : i32
    %c0_i32_1 = arith.constant 0 : i32
    return %c0_i32, %c0_i32_0 : i32, i32
  }
  func.func @transform_1(%arg0: i32) -> (i32, i32) {
    %c0_i32 = arith.constant 0 : i32
    %c0_i32_0 = arith.constant 0 : i32
    return %c0_i32, %arg0 : i32, i32
  }
  func.func @transform_2(%arg0: i32) -> (i32, i32) {
    %c0_i32 = arith.constant 0 : i32
    %c0_i32_0 = arith.constant 0 : i32
    return %c0_i32, %arg0 : i32, i32
  }
  func.func @transform_3(%arg0: i32) -> (i32, i32) {
    %c0_i32 = arith.constant 0 : i32
    %c0_i32_0 = arith.constant 0 : i32
    return %c0_i32, %arg0 : i32, i32
  }
  func.func @transform_4(%arg0: i32) -> (i32, i32) {
    %c0_i32 = arith.constant 0 : i32
    %c0_i32_0 = arith.constant 0 : i32
    return %c0_i32, %arg0 : i32, i32
  }
}

</mosaic_0001>

<bundles_post_ra>
// kernel: tpu_custom_call.1
= control target key start
LH: loop header
LB: loop body
LE: loop exit
PB: predicated region body
PF: predicated region fallthrough
CT: control target
= control target key end

     0   :  { %v1467_v0 = vmov 0.0   ;;  %vm1468_vm0 = vmmov 0   ;;  %vm206_vm1 = vcmask 261120   ;;  %v1469_v52 = vmov 1.0   ;;  %s2390_s1 = inlined_call_operand.vmem [shape: bf16[32,64], index: 1, kind: input, shape index: {}]   ;;  %s2391_s0 = inlined_call_operand.vmem [shape: bf16[392,32], index: 0, kind: input, shape index: {}]   ;;  %s2392_s2 = inlined_call_operand.vmem [shape: f32[1,64], index: 2, kind: input, shape index: {}]   ;;  %s2393_s3 = inlined_call_operand.vmem [shape: f32[1,64], index: 3, kind: input, shape index: {}]   ;;  %s2394_s4 = inlined_call_operand.vmem [shape: f32[392,64], index: 4, kind: output, shape index: {}]  }
   0x1   :  { %1327 = vmatprep.subr.bf16.mxu0 %v1467_v0  ;;  %v1438_v1 = vld [vmem:[%s2390_s1 + $0x8] sm:$0xff]   ;;  %1331 = vmatprep.mubr.msk.bf16.mxu0 %vm1468_vm0, %v1467_v0  ;;  %v1439_v2 = vld [vmem:[%s2390_s1] sm:$0xff]   ;;  %v1456_v5 = vld [vmem:[%s2391_s0 + $0x98] sm:$0xff]   ;;  %vm514_vm2 = vcmask 64512   ;;  %vm1120_vm3 = vcmask 523264  }
   0x2   :  { %1431 = vmatprep.subr.bf16.mxu1 %v1467_v0  ;;  %1407 = vmatprep.mubr.msk.bf16.mxu1 %vm1468_vm0, %v1467_v0  ;;  %v1440_v3 = vld [vmem:[%s2391_s0] sm:$0xff]   ;;  %v1441_v4 = vld [vmem:[%s2391_s0 + $0x8] sm:$0xff]   ;;  %v1442_v6 = vld [vmem:[%s2391_s0 + $0x10] sm:$0xff]  }
   0x3   :  { %1328 = vmatpush3.bf16.msra.mxu0 %v1438_v1  ;;  %1433 = vmatpush3.bf16.msra.mxu1 %v1438_v1  ;;  %v1457_v7 = vld [vmem:[%s2391_s0 + $0xa0] sm:$0xff]   ;;  %v1443_v8 = vld [vmem:[%s2391_s0 + $0x18] sm:$0xff]   ;;  %v1458_v9 = vld [vmem:[%s2391_s0 + $0xa8] sm:$0xff]  }
   0x4   :  { %1329 = vmatprep.subr.bf16.mxu0 %v1467_v0  ;;  %1432 = vmatprep.subr.bf16.mxu1 %v1467_v0  ;;  %v1444_v10 = vld [vmem:[%s2391_s0 + $0x20] sm:$0xff]   ;;  %v1459_v11 = vld [vmem:[%s2391_s0 + $0xb0] sm:$0xff]   ;;  %v1445_v12 = vld [vmem:[%s2391_s0 + $0x28] sm:$0xff]  }
   0x5   :  { %v1460_v13 = vld [vmem:[%s2391_s0 + $0xb8] sm:$0xff]   ;;  %v1446_v14 = vld [vmem:[%s2391_s0 + $0x30] sm:$0xff]   ;;  %v1464_v15 = vld [vmem:[%s2391_s0 + $0xc0] ss:$0 sps:$4 sm:$0xff]  }
   0x6   :  { %v1447_v16 = vld [vmem:[%s2391_s0 + $0x38] sm:$0xff]   ;;  %v1448_v17 = vld [vmem:[%s2391_s0 + $0x40] sm:$0xff]   ;;  %v1449_v18 = vld [vmem:[%s2391_s0 + $0x48] sm:$0xff]  }
   0x7   :  { %1330 = vmatpush3.bf16.msra.mxu0 %v1439_v2  ;;  %1434 = vmatpush3.bf16.msra.mxu1 %v1439_v2  ;;  %v1450_v19 = vld [vmem:[%s2391_s0 + $0x50] sm:$0xff]   ;;  %v1451_v20 = vld [vmem:[%s2391_s0 + $0x58] sm:$0xff]   ;;  %v1452_v21 = vld [vmem:[%s2391_s0 + $0x60] sm:$0xff]  }
   0x8   :  { %v1453_v22 = vld [vmem:[%s2391_s0 + $0x68] sm:$0xff]   ;;  %v1454_v23 = vld [vmem:[%s2391_s0 + $0x70] sm:$0xff]   ;;  %v1455_v24 = vld [vmem:[%s2391_s0 + $0x78] sm:$0xff]  }
   0x9   :  { %v1461_v25 = vld [vmem:[%s2391_s0 + $0x80] sm:$0xff]   ;;  %v1462_v26 = vld [vmem:[%s2391_s0 + $0x88] sm:$0xff]   ;;  %v1463_v27 = vld [vmem:[%s2391_s0 + $0x90] sm:$0xff]  }
   0xa   :  { %1332 = vmatmul.mubr.msk.bf16.vlgmr.msra.gmra.mxu0 %vm206_vm1, %v1440_v3  ;;  %1408 = vmatmul.mubr.msk.bf16.vlgmr.msra.gmra.mxu1 %vm206_vm1, %v1456_v5 }
   0xb   :  { %1335 = vmatprep.mubr.msk.bf16.mxu0 %vm1468_vm0, %v1467_v0  ;;  %1411 = vmatprep.mubr.msk.bf16.mxu1 %vm1468_vm0, %v1467_v0 }
  0x12   :  { %1336 = vmatmul.mubr.msk.bf16.gmra.mxu0 %vm206_vm1, %v1441_v4  ;;  %1412 = vmatmul.mubr.msk.bf16.gmra.mxu1 %vm206_vm1, %v1457_v7 }
  0x13   :  { %1339 = vmatprep.mubr.msk.bf16.mxu0 %vm1468_vm0, %v1467_v0  ;;  %1415 = vmatprep.mubr.msk.bf16.mxu1 %vm1468_vm0, %v1467_v0 }
  0x1a   :  { %1340 = vmatmul.mubr.msk.bf16.gmra.mxu0 %vm206_vm1, %v1442_v6  ;;  %1416 = vmatmul.mubr.msk.bf16.gmra.mxu1 %vm206_vm1, %v1458_v9 }
  0x1b   :  { %1343 = vmatprep.mubr.msk.bf16.mxu0 %vm1468_vm0, %v1467_v0  ;;  %1419 = vmatprep.mubr.msk.bf16.mxu1 %vm1468_vm0, %v1467_v0 }
  0x22   :  { %1344 = vmatmul.mubr.msk.bf16.gmra.mxu0 %vm206_vm1, %v1443_v8  ;;  %1420 = vmatmul.mubr.msk.bf16.gmra.mxu1 %vm206_vm1, %v1459_v11 }
  0x23   :  { %1347 = vmatprep.mubr.msk.bf16.mxu0 %vm1468_vm0, %v1467_v0  ;;  %1423 = vmatprep.mubr.msk.bf16.mxu1 %vm1468_vm0, %v1467_v0 }
  0x2a   :  { %1348 = vmatmul.mubr.msk.bf16.gmra.mxu0 %vm206_vm1, %v1444_v10  ;;  %1424 = vmatmul.mubr.msk.bf16.gmra.mxu1 %vm206_vm1, %v1460_v13 }
  0x2b   :  { %1351 = vmatprep.mubr.msk.bf16.mxu0 %vm1468_vm0, %v1467_v0  ;;  %1427 = vmatprep.mubr.msk.bf16.mxu1 %vm1468_vm0, %v1467_v0 }
  0x32   :  { %1352 = vmatmul.mubr.msk.bf16.gmra.mxu0 %vm206_vm1, %v1445_v12  ;;  %1428 = vmatmul.mubr.msk.bf16.gmra.mxu1 %vm206_vm1, %v1464_v15 }
  0x33   :  { %1355 = vmatprep.mubr.msk.bf16.mxu0 %vm1468_vm0, %v1467_v0  ;;  %582 = vmatprep.mubr.f32.mxu1 %v1469_v52 }
  0x3a   :  { %1356 = vmatmul.mubr.msk.bf16.gmra.mxu0 %vm206_vm1, %v1446_v14 }
  0x3b   :  { %1359 = vmatprep.mubr.msk.bf16.mxu0 %vm1468_vm0, %v1467_v0 }
  0x42   :  { %1360 = vmatmul.mubr.msk.bf16.gmra.mxu0 %vm206_vm1, %v1447_v16 }
  0x43   :  { %1363 = vmatprep.mubr.msk.bf16.mxu0 %vm1468_vm0, %v1467_v0 }
  0x4a   :  { %1364 = vmatmul.mubr.msk.bf16.gmra.mxu0 %vm206_vm1, %v1448_v17 }
  0x4b   :  { %1367 = vmatprep.mubr.msk.bf16.mxu0 %vm1468_vm0, %v1467_v0 }
  0x52   :  { %1368 = vmatmul.mubr.msk.bf16.gmra.mxu0 %vm206_vm1, %v1449_v18 }
  0x53   :  { %1371 = vmatprep.mubr.msk.bf16.mxu0 %vm1468_vm0, %v1467_v0 }
  0x5a   :  { %1372 = vmatmul.mubr.msk.bf16.gmra.mxu0 %vm206_vm1, %v1450_v19 }
  0x5b   :  { %1375 = vmatprep.mubr.msk.bf16.mxu0 %vm1468_vm0, %v1467_v0 }
  0x62   :  { %1376 = vmatmul.mubr.msk.bf16.gmra.mxu0 %vm206_vm1, %v1451_v20 }
  0x63   :  { %1379 = vmatprep.mubr.msk.bf16.mxu0 %vm1468_vm0, %v1467_v0 }
  0x6a   :  { %1380 = vmatmul.mubr.msk.bf16.gmra.mxu0 %vm206_vm1, %v1452_v21 }
  0x6b   :  { %1383 = vmatprep.mubr.msk.bf16.mxu0 %vm1468_vm0, %v1467_v0 }
  0x72   :  { %1384 = vmatmul.mubr.msk.bf16.gmra.mxu0 %vm206_vm1, %v1453_v22 }
  0x73   :  { %1387 = vmatprep.mubr.msk.bf16.mxu0 %vm1468_vm0, %v1467_v0 }
  0x7a   :  { %1388 = vmatmul.mubr.msk.bf16.gmra.mxu0 %vm206_vm1, %v1454_v23 }
  0x7b   :  { %1391 = vmatprep.mubr.msk.bf16.mxu0 %vm1468_vm0, %v1467_v0 }
  0x82   :  { %1392 = vmatmul.mubr.msk.bf16.gmra.mxu0 %vm206_vm1, %v1455_v24 }
  0x83   :  { %1395 = vmatprep.mubr.msk.bf16.mxu0 %vm1468_vm0, %v1467_v0 }
  0x8a   :  { %1396 = vmatmul.mubr.msk.bf16.gmra.mxu0 %vm206_vm1, %v1461_v25 }
  0x8b   :  { %1399 = vmatprep.mubr.msk.bf16.mxu0 %vm1468_vm0, %v1467_v0 }
  0x92   :  { %1400 = vmatmul.mubr.msk.bf16.gmra.mxu0 %vm206_vm1, %v1462_v26 }
  0x93   :  { %1403 = vmatprep.mubr.msk.bf16.mxu0 %vm1468_vm0, %v1467_v0 }
  0x9a   :  { %1404 = vmatmul.mubr.msk.bf16.gmra.mxu0 %vm206_vm1, %v1463_v27 }
  0xca   :  { %v1655_v28 = vpop.f32.mrf.mxu0  ;;  %v1661_v34 = vpop.f32.mrf.mxu1 }
  0xcc   :  { %v1333_v29 = vpop.f32.mrf.mxu0  ;;  %v1409_v36 = vpop.f32.mrf.mxu1 }
  0xce   :  { %v1657_v30 = vpop.f32.mrf.mxu0  ;;  %v1665_v38 = vpop.f32.mrf.mxu1 }
  0xd0   :  { %v1334_v31 = vpop.f32.mrf.mxu0  ;;  %v1410_v40 = vpop.f32.mrf.mxu1 }
  0xd2   :  { %v1659_v32 = vpop.f32.mrf.mxu0  ;;  %v1669_v42 = vpop.f32.mrf.mxu1 }
  0xd4   :  { %v1337_v33 = vpop.f32.mrf.mxu0  ;;  %v1413_v44 = vpop.f32.mrf.mxu1 }
  0xd6   :  { %v1663_v35 = vpop.f32.mrf.mxu0  ;;  %v1673_v46 = vpop.f32.mrf.mxu1 }
  0xd8   :  { %v1338_v37 = vpop.f32.mrf.mxu0  ;;  %v1414_v48 = vpop.f32.mrf.mxu1 }
  0xda   :  { %v1667_v39 = vpop.f32.mrf.mxu0  ;;  %v1677_v50 = vpop.f32.mrf.mxu1 }
  0xdc   :  { %v1341_v41 = vpop.f32.mrf.mxu0  ;;  %v1417_v53 = vpop.f32.mrf.mxu1 }
  0xde   :  { %v1671_v43 = vpop.f32.mrf.mxu0  ;;  %v1682_v55 = vpop.f32.mrf.mxu1 }
  0xdf   :  { %2401 = vst [vmem:[#allocation2_spill] sm:$0xff] %v1682_v55 }
  0xe0   :  { %v1342_v45 = vpop.f32.mrf.mxu0  ;;  %v1418_v57 = vpop.f32.mrf.mxu1 }
  0xe2   :  { %v1675_v47 = vpop.f32.mrf.mxu0  ;;  %v1686_v59 = vpop.f32.mrf.mxu1 }
  0xe3   :  { %2402 = vst [vmem:[#allocation3_spill] sm:$0xff] %v1686_v59 }
  0xe4   :  { %v1345_v49 = vpop.f32.mrf.mxu0  ;;  %v1421_v61 = vpop.f32.mrf.mxu1 }
  0xe6   :  { %v1679_v51 = vpop.f32.mrf.mxu0  ;;  %v1690_v63 = vpop.f32.mrf.mxu1 }
  0xe7   :  { %2403 = vst [vmem:[#allocation4_spill] sm:$0xff] %v1690_v63 }
  0xe8   :  { %v1346_v54 = vpop.f32.mrf.mxu0  ;;  %v1422_v2 = vpop.f32.mrf.mxu1 }
  0xea   :  { %v1684_v56 = vpop.f32.mrf.mxu0  ;;  %v1694_v4 = vpop.f32.mrf.mxu1 }
  0xeb   :  { %2404 = vst [vmem:[#allocation5_spill] sm:$0xff] %v1694_v4 }
  0xec   :  { %v1349_v58 = vpop.f32.mrf.mxu0  ;;  %v1425_v6 = vpop.f32.mrf.mxu1 }
  0xee   :  { %v1688_v60 = vpop.f32.mrf.mxu0  ;;  %v1698_v8 = vpop.f32.mrf.mxu1 }
  0xef   :  { %2405 = vst [vmem:[#allocation6_spill] sm:$0xff] %v1698_v8 }
  0xf0   :  { %v1350_v62 = vpop.f32.mrf.mxu0  ;;  %v1426_v10 = vpop.f32.mrf.mxu1 }
  0xf2   :  { %v1692_v1 = vpop.f32.mrf.mxu0  ;;  %v1704_v14 = vpop.f32.mrf.mxu1 }
  0xf3   :  { %2406 = vst [vmem:[#allocation7_spill] sm:$0xff] %v1704_v14 }
  0xf4   :  { %v1353_v3 = vpop.f32.mrf.mxu0  ;;  %v1429_v16 = vpop.f32.mrf.mxu1 }
  0xf6   :  { %v1696_v5 = vpop.f32.mrf.mxu0  ;;  %v511_v18 = vpop.f32.mrf.mxu1 }
  0xf8   :  { %v1354_v7 = vpop.f32.mrf.mxu0  ;;  %v1430_v20 = vpop.f32.mrf.mxu1 }
  0xfa   :  { %v1700_v9 = vpop.f32.mrf.mxu0 }
  0xfc   :  { %v1357_v11 = vpop.f32.mrf.mxu0 }
  0xfe   :  { %v1702_v12 = vpop.f32.mrf.mxu0 }
 0x100   :  { %v1358_v13 = vpop.f32.mrf.mxu0 }
 0x102   :  { %v1706_v15 = vpop.f32.mrf.mxu0 }
 0x104   :  { %v1361_v17 = vpop.f32.mrf.mxu0 }
 0x106   :  { %v1708_v19 = vpop.f32.mrf.mxu0 }
 0x108   :  { %v1362_v21 = vpop.f32.mrf.mxu0 }
 0x10a   :  { %v1710_v22 = vpop.f32.mrf.mxu0 }
 0x10c   :  { %v1365_v23 = vpop.f32.mrf.mxu0 }
 0x10e   :  { %v1712_v24 = vpop.f32.mrf.mxu0 }
 0x110   :  { %v1366_v25 = vpop.f32.mrf.mxu0 }
 0x112   :  { %v1714_v26 = vpop.f32.mrf.mxu0 }
 0x114   :  { %v1369_v27 = vpop.f32.mrf.mxu0 }
 0x116   :  { %v1716_v29 = vpop.f32.mrf.mxu0 }
 0x118   :  { %v1370_v31 = vpop.f32.mrf.mxu0 }
 0x11a   :  { %v1718_v33 = vpop.f32.mrf.mxu0 }
 0x11c   :  { %v1373_v36 = vpop.f32.mrf.mxu0 }
 0x11e   :  { %v1720_v37 = vpop.f32.mrf.mxu0 }
 0x120   :  { %v1374_v40 = vpop.f32.mrf.mxu0 }
 0x122   :  { %v1722_v41 = vpop.f32.mrf.mxu0 }
 0x124   :  { %v1377_v44 = vpop.f32.mrf.mxu0 }
 0x126   :  { %v1724_v45 = vpop.f32.mrf.mxu0 }
 0x128   :  { %v1378_v48 = vpop.f32.mrf.mxu0 }
 0x12a   :  { %v1726_v49 = vpop.f32.mrf.mxu0 }
 0x12c   :  { %v1381_v53 = vpop.f32.mrf.mxu0 }
 0x12e   :  { %v1728_v54 = vpop.f32.mrf.mxu0 }
 0x130   :  { %v1382_v57 = vpop.f32.mrf.mxu0 }
 0x132   :  { %v1730_v58 = vpop.f32.mrf.mxu0 }
 0x134   :  { %v1385_v61 = vpop.f32.mrf.mxu0 }
 0x135   :  { %v673_v61 = vmul.f32 %v1708_v19, %v1708_v19 }
 0x136   :  { %v1732_v62 = vpop.f32.mrf.mxu0 }
 0x138   :  { %v1386_v2 = vpop.f32.mrf.mxu0 }
 0x13a   :  { %v1734_v3 = vpop.f32.mrf.mxu0 }
 0x13c   :  { %v1389_v6 = vpop.f32.mrf.mxu0 }
 0x13d   :  { %v672_v6 = vmul.f32 %v1706_v15, %v1706_v15 }
 0x13e   :  { %v1736_v7 = vpop.f32.mrf.mxu0 }
 0x140   :  { %v1390_v10 = vpop.f32.mrf.mxu0 }
 0x141   :  { %v687_v10 = vmul.f32 %v1736_v7, %v1736_v7 }
 0x142   :  { %v1738_v11 = vpop.f32.mrf.mxu0 }
 0x143   :  { %v688_v2 = vmul.f32 %v1738_v11, %v1738_v11 }
 0x144   :  { %v1393_v13 = vpop.f32.mrf.mxu0 }
 0x145   :  { %v671_v13 = vmul.f32 %v1702_v12, %v1702_v12 }
 0x146   :  { %v1740_v16 = vpop.f32.mrf.mxu0 }
 0x147   :  { %1257 = vmatprep.subr.mxu1 %v1740_v16  ;;  %v689_v57 = vmul.f32 %v1740_v16, %v1740_v16 }
 0x148   :  { %v1394_v17 = vpop.f32.mrf.mxu0  ;;  %1258 = vmatpush3.msra.mxu1 %v1708_v19 }
 0x149   :  { %1259 = vmatprep.subr.mxu1 %v1738_v11  ;;  %v686_v17 = vmul.f32 %v1734_v3, %v1734_v3 }
 0x14a   :  { %1260 = vmatpush3.msra.mxu1 %v1706_v15  ;;  %v1746_v18 = vpop.f32.mrf.mxu0 }
 0x14b   :  { %1261 = vmatprep.subr.mxu1 %v1736_v7 }
 0x14c   :  { %1262 = vmatpush3.msra.mxu1 %v1702_v12  ;;  %v1397_v20 = vpop.f32.mrf.mxu0 }
 0x14d   :  { %1263 = vmatprep.subr.mxu1 %v1734_v3  ;;  %v670_v20 = vmul.f32 %v1700_v9, %v1700_v9 }
 0x14e   :  { %1264 = vmatpush3.msra.mxu1 %v1700_v9  ;;  %v1752_v21 = vpop.f32.mrf.mxu0 }
 0x14f   :  { %1265 = vmatprep.subr.mxu1 %v1732_v62 }
 0x150   :  { %1266 = vmatpush3.msra.mxu1 %v1696_v5  ;;  %v1398_v23 = vpop.f32.mrf.mxu0 }
 0x151   :  { %1267 = vmatprep.subr.mxu1 %v1730_v58  ;;  %v685_v23 = vmul.f32 %v1732_v62, %v1732_v62 }
 0x152   :  { %1268 = vmatpush3.msra.mxu1 %v1692_v1  ;;  %v1758_v25 = vpop.f32.mrf.mxu0 }
 0x153   :  { %1269 = vmatprep.subr.mxu1 %v1728_v54 }
 0x154   :  { %1270 = vmatpush3.msra.mxu1 %v1688_v60  ;;  %v1401_v27 = vpop.f32.mrf.mxu0 }
 0x155   :  { %1271 = vmatprep.subr.mxu1 %v1726_v49  ;;  %v669_v27 = vmul.f32 %v1696_v5, %v1696_v5 }
 0x156   :  { %1272 = vmatpush3.msra.mxu1 %v1684_v56  ;;  %v1764_v31 = vpop.f32.mrf.mxu0 }
 0x157   :  { %1273 = vmatprep.subr.mxu1 %v1724_v45 }
 0x158   :  { %1274 = vmatpush3.msra.mxu1 %v1679_v51  ;;  %v1402_v36 = vpop.f32.mrf.mxu0 }
 0x159   :  { %1275 = vmatprep.subr.mxu1 %v1722_v41  ;;  %v684_v36 = vmul.f32 %v1730_v58, %v1730_v58 }
 0x15a   :  { %1276 = vmatpush3.msra.mxu1 %v1675_v47  ;;  %v1770_v40 = vpop.f32.mrf.mxu0 }
 0x15b   :  { %1277 = vmatprep.subr.mxu1 %v1720_v37 }
 0x15c   :  { %1278 = vmatpush3.msra.mxu1 %v1671_v43  ;;  %v1405_v44 = vpop.f32.mrf.mxu0 }
 0x15d   :  { %1279 = vmatprep.subr.mxu1 %v1718_v33  ;;  %v668_v44 = vmul.f32 %v1692_v1, %v1692_v1 }
 0x15e   :  { %1280 = vmatpush3.msra.mxu1 %v1667_v39  ;;  %v1776_v48 = vpop.f32.mrf.mxu0 }
 0x15f   :  { %1281 = vmatprep.subr.mxu1 %v1716_v29 }
 0x160   :  { %1282 = vmatpush3.msra.mxu1 %v1663_v35  ;;  %v1406_v53 = vpop.f32.mrf.mxu0 }
 0x161   :  { %1283 = vmatprep.subr.mxu1 %v1714_v26  ;;  %v683_v53 = vmul.f32 %v1728_v54, %v1728_v54 }
 0x162   :  { %1284 = vmatpush3.msra.mxu1 %v1659_v32 }
 0x163   :  { %1285 = vmatprep.subr.mxu1 %v1712_v24 }
 0x164   :  { %1286 = vmatpush3.msra.mxu1 %v1657_v30 }
 0x165   :  { %1287 = vmatprep.subr.mxu1 %v1710_v22 }
 0x166   :  { %1288 = vmatpush3.msra.mxu1 %v1655_v28 }
 0x167   :  { %588 = vmatprep.subr.mxu1 %v1467_v0  ;;  %583 = vmatmul.mubr.f32.vlgmr.msra.gmra.mxu1 %v1469_v52 }
 0x168   :  { %589 = vmatpush1.msra.mxu1 %v1698_v8  ;;  %1226 = vmatprep.mubr.msk.f32.mxu1 %vm514_vm2, %v1469_v52 }
 0x169   :  { %590 = vmatprep.subr.mxu1 %v1467_v0 }
 0x16a   :  { %591 = vmatpush1.msra.mxu1 %v1694_v4 }
 0x16b   :  { %592 = vmatprep.subr.mxu1 %v1467_v0 }
 0x16c   :  { %593 = vmatpush1.msra.mxu1 %v1690_v63 }
 0x16d   :  { %594 = vmatprep.subr.mxu1 %v1467_v0 }
 0x16e   :  { %595 = vmatpush1.msra.mxu1 %v1686_v59 }
 0x16f   :  { %596 = vmatprep.subr.mxu1 %v1467_v0 }
 0x170   :  { %597 = vmatpush1.msra.mxu1 %v1682_v55 }
 0x171   :  { %598 = vmatprep.subr.mxu1 %v1467_v0 }
 0x172   :  { %599 = vmatpush1.msra.mxu1 %v1677_v50 }
 0x173   :  { %600 = vmatprep.subr.mxu1 %v1467_v0 }
 0x174   :  { %601 = vmatpush1.msra.mxu1 %v1673_v46 }
 0x175   :  { %602 = vmatprep.subr.mxu1 %v1467_v0 }
 0x176   :  { %603 = vmatpush1.msra.mxu1 %v1669_v42 }
 0x177   :  { %604 = vmatprep.subr.mxu1 %v1467_v0 }
 0x178   :  { %605 = vmatpush1.msra.mxu1 %v1665_v38 }
 0x179   :  { %606 = vmatprep.subr.mxu1 %v1467_v0 }
 0x17a   :  { %607 = vmatpush1.msra.mxu1 %v1661_v34 }
 0x17b   :  { %608 = vmatprep.subr.mxu1 %v1467_v0 }
 0x17c   :  { %609 = vmatpush1.msra.mxu1 %v1776_v48 }
 0x17d   :  { %610 = vmatprep.subr.mxu1 %v1467_v0 }
 0x17e   :  { %611 = vmatpush1.msra.mxu1 %v1770_v40 }
 0x17f   :  { %612 = vmatprep.subr.mxu1 %v1467_v0 }
 0x180   :  { %613 = vmatpush1.msra.mxu1 %v1764_v31 }
 0x181   :  { %614 = vmatprep.subr.mxu1 %v1467_v0 }
 0x182   :  { %615 = vmatpush1.msra.mxu1 %v1758_v25 }
 0x183   :  { %616 = vmatprep.subr.mxu1 %v1467_v0 }
 0x184   :  { %617 = vmatpush1.msra.mxu1 %v1752_v21 }
 0x185   :  { %618 = vmatprep.subr.mxu1 %v1467_v0 }
 0x186   :  { %619 = vmatpush1.msra.mxu1 %v1746_v18 }
 0x187   :  { %650 = vmatprep.subr.mxu1 %v1467_v0 }
 0x188   :  { %651 = vmatpush2.msra.mxu1 %v1704_v14 }
 0x189   :  { %653 = vmatmul.mubr.f32.vlgmr.msra.gmra.mxu1 %v1469_v52  ;;  %1292 = vmatprep.subr.mxu1 %v689_v57  ;;  %v667_v57 = vmul.f32 %v1688_v60, %v1688_v60 }
 0x18a   :  { %1293 = vmatpush3.msra.mxu1 %v673_v61  ;;  %771 = vmatprep.mubr.f32.mxu1 %v1469_v52  ;;  %v682_v61 = vmul.f32 %v1726_v49, %v1726_v49 }
 0x18b   :  { %1294 = vmatprep.subr.mxu1 %v688_v2  ;;  %v666_v2 = vmul.f32 %v1684_v56, %v1684_v56 }
 0x18c   :  { %1295 = vmatpush3.msra.mxu1 %v672_v6  ;;  %v681_v6 = vmul.f32 %v1724_v45, %v1724_v45 }
 0x18d   :  { %1296 = vmatprep.subr.mxu1 %v687_v10  ;;  %v665_v10 = vmul.f32 %v1679_v51, %v1679_v51 }
 0x18e   :  { %1297 = vmatpush3.msra.mxu1 %v671_v13  ;;  %v680_v13 = vmul.f32 %v1722_v41, %v1722_v41 }
 0x18f   :  { %1298 = vmatprep.subr.mxu1 %v686_v17  ;;  %v664_v17 = vmul.f32 %v1675_v47, %v1675_v47 }
 0x190   :  { %1299 = vmatpush3.msra.mxu1 %v670_v20  ;;  %v679_v20 = vmul.f32 %v1720_v37, %v1720_v37 }
 0x191   :  { %1300 = vmatprep.subr.mxu1 %v685_v23  ;;  %v663_v23 = vmul.f32 %v1671_v43, %v1671_v43 }
 0x192   :  { %1301 = vmatpush3.msra.mxu1 %v669_v27  ;;  %v678_v27 = vmul.f32 %v1718_v33, %v1718_v33 }
 0x193   :  { %1302 = vmatprep.subr.mxu1 %v684_v36  ;;  %v662_v36 = vmul.f32 %v1667_v39, %v1667_v39 }
 0x194   :  { %1303 = vmatpush3.msra.mxu1 %v668_v44  ;;  %v677_v44 = vmul.f32 %v1716_v29, %v1716_v29 }
 0x195   :  { %1304 = vmatprep.subr.mxu1 %v683_v53  ;;  %v661_v53 = vmul.f32 %v1663_v35, %v1663_v35 }
 0x196   :  { %1305 = vmatpush3.msra.mxu1 %v667_v57  ;;  %v676_v57 = vmul.f32 %v1714_v26, %v1714_v26 }
 0x197   :  { %1306 = vmatprep.subr.mxu1 %v682_v61  ;;  %v660_v61 = vmul.f32 %v1659_v32, %v1659_v32 }
 0x198   :  { %1307 = vmatpush3.msra.mxu1 %v666_v2  ;;  %v675_v2 = vmul.f32 %v1712_v24, %v1712_v24 }
 0x199   :  { %1308 = vmatprep.subr.mxu1 %v681_v6  ;;  %v659_v6 = vmul.f32 %v1657_v30, %v1657_v30 }
 0x19a   :  { %1309 = vmatpush3.msra.mxu1 %v665_v10  ;;  %v674_v10 = vmul.f32 %v1710_v22, %v1710_v22 }
 0x19b   :  { %1310 = vmatprep.subr.mxu1 %v680_v13  ;;  %v658_v13 = vmul.f32 %v1655_v28, %v1655_v28 }
 0x19c   :  { %1311 = vmatpush3.msra.mxu1 %v664_v17  ;;  %v705_v17 = vmul.f32 %v1698_v8, %v1698_v8 }
 0x19d   :  { %1312 = vmatprep.subr.mxu1 %v679_v20  ;;  %v704_v20 = vmul.f32 %v1694_v4, %v1694_v4 }
 0x19e   :  { %1313 = vmatpush3.msra.mxu1 %v663_v23  ;;  %v703_v23 = vmul.f32 %v1690_v63, %v1690_v63 }
 0x19f   :  { %1314 = vmatprep.subr.mxu1 %v678_v27  ;;  %v702_v27 = vmul.f32 %v1686_v59, %v1686_v59 }
 0x1a0   :  { %1315 = vmatpush3.msra.mxu1 %v662_v36  ;;  %v701_v36 = vmul.f32 %v1682_v55, %v1682_v55 }
 0x1a1   :  { %1316 = vmatprep.subr.mxu1 %v677_v44  ;;  %v700_v44 = vmul.f32 %v1677_v50, %v1677_v50 }
 0x1a2   :  { %1317 = vmatpush3.msra.mxu1 %v661_v53  ;;  %v699_v53 = vmul.f32 %v1673_v46, %v1673_v46 }
 0x1a3   :  { %1318 = vmatprep.subr.mxu1 %v676_v57  ;;  %v698_v57 = vmul.f32 %v1669_v42, %v1669_v42 }
 0x1a4   :  { %1319 = vmatpush3.msra.mxu1 %v660_v61  ;;  %v697_v61 = vmul.f32 %v1665_v38, %v1665_v38 }
 0x1a5   :  { %1320 = vmatprep.subr.mxu1 %v675_v2  ;;  %v696_v2 = vmul.f32 %v1661_v34, %v1661_v34 }
 0x1a6   :  { %1321 = vmatpush3.msra.mxu1 %v659_v6  ;;  %v695_v6 = vmul.f32 %v1776_v48, %v1776_v48 }
 0x1a7   :  { %1322 = vmatprep.subr.mxu1 %v674_v10  ;;  %v694_v10 = vmul.f32 %v1770_v40, %v1770_v40 }
 0x1a8   :  { %1323 = vmatpush3.msra.mxu1 %v658_v13  ;;  %v693_v13 = vmul.f32 %v1764_v31, %v1764_v31 }
 0x1a9   :  { %777 = vmatprep.subr.mxu1 %v1467_v0  ;;  %772 = vmatmul.mubr.f32.vlgmr.msra.gmra.mxu1 %v1469_v52 }
 0x1aa   :  { %778 = vmatpush1.msra.mxu1 %v705_v17  ;;  %1227 = vmatprep.mubr.msk.f32.mxu1 %vm514_vm2, %v1469_v52  ;;  %v692_v17 = vmul.f32 %v1758_v25, %v1758_v25 }
 0x1ab   :  { %779 = vmatprep.subr.mxu1 %v1467_v0 }
 0x1ac   :  { %780 = vmatpush1.msra.mxu1 %v704_v20  ;;  %v691_v20 = vmul.f32 %v1752_v21, %v1752_v21 }
 0x1ad   :  { %781 = vmatprep.subr.mxu1 %v1467_v0 }
 0x1ae   :  { %782 = vmatpush1.msra.mxu1 %v703_v23  ;;  %v690_v23 = vmul.f32 %v1746_v18, %v1746_v18 }
 0x1af   :  { %783 = vmatprep.subr.mxu1 %v1467_v0 }
 0x1b0   :  { %784 = vmatpush1.msra.mxu1 %v702_v27  ;;  %v706_v27 = vmul.f32 %v1704_v14, %v1704_v14 }
 0x1b1   :  { %785 = vmatprep.subr.mxu1 %v1467_v0 }
 0x1b2   :  { %786 = vmatpush1.msra.mxu1 %v701_v36 }
 0x1b3   :  { %787 = vmatprep.subr.mxu1 %v1467_v0 }
 0x1b4   :  { %788 = vmatpush1.msra.mxu1 %v700_v44 }
 0x1b5   :  { %789 = vmatprep.subr.mxu1 %v1467_v0 }
 0x1b6   :  { %790 = vmatpush1.msra.mxu1 %v699_v53 }
 0x1b7   :  { %791 = vmatprep.subr.mxu1 %v1467_v0 }
 0x1b8   :  { %792 = vmatpush1.msra.mxu1 %v698_v57 }
 0x1b9   :  { %793 = vmatprep.subr.mxu1 %v1467_v0 }
 0x1ba   :  { %794 = vmatpush1.msra.mxu1 %v697_v61 }
 0x1bb   :  { %795 = vmatprep.subr.mxu1 %v1467_v0 }
 0x1bc   :  { %796 = vmatpush1.msra.mxu1 %v696_v2 }
 0x1bd   :  { %797 = vmatprep.subr.mxu1 %v1467_v0 }
 0x1be   :  { %798 = vmatpush1.msra.mxu1 %v695_v6 }
 0x1bf   :  { %799 = vmatprep.subr.mxu1 %v1467_v0 }
 0x1c0   :  { %800 = vmatpush1.msra.mxu1 %v694_v10  ;;  %v853_v10 = vlaneseq }
 0x1c1   :  { %801 = vmatprep.subr.mxu1 %v1467_v0 }
 0x1c2   :  { %802 = vmatpush1.msra.mxu1 %v693_v13  ;;  %v854_v8 = vshrl.u32 %v853_v10, 7 }
 0x1c3   :  { %803 = vmatprep.subr.mxu1 %v1467_v0 }
 0x1c4   :  { %804 = vmatpush1.msra.mxu1 %v692_v17 }
 0x1c5   :  { %805 = vmatprep.subr.mxu1 %v1467_v0 }
 0x1c6   :  { %806 = vmatpush1.msra.mxu1 %v691_v20 }
 0x1c7   :  { %807 = vmatprep.subr.mxu1 %v1467_v0 }
 0x1c8   :  { %808 = vmatpush1.msra.mxu1 %v690_v23 }
 0x1c9   :  { %839 = vmatprep.subr.mxu1 %v1467_v0 }
 0x1ca   :  { %840 = vmatpush2.msra.mxu1 %v706_v27  ;;  %v855_v27 = vsub.s32 0, %v854_v8 }
 0x1cb   :  { %842 = vmatmul.mubr.f32.vlgmr.msra.gmra.mxu1 %v1469_v52 }
 0x227   :  { %v1289_v36 = vpop.f32.mrf.mxu1 }
 0x229   :  { %v1290_v44 = vpop.f32.mrf.mxu1 }
 0x22a   :  { %v1291_v53 = vadd.f32 %v1290_v44, %v1289_v36 }
 0x249   :  { %v654_v57 = vpop.f32.mrf.mxu1 }
 0x24a   :  { %v655_v61 = vadd.f32 %v1291_v53, %v654_v57 }
 0x24b   :  { %v656_v2 = vpop.f32.mrf.mxu1 }
 0x24c   :  { %v847_v17 = vmul.f32 0.0025510204, %v655_v61 }
 0x24e   :  { %v849_v63 = vmul.f32 %v847_v17, %v847_v17  ;;  %v1944_v55 = vrot.slane %v847_v17, %v855_v27 }
 0x250   :  { %v857_v36 = vsub.f32 %v1655_v28, %v1944_v55  ;;  %v858_v44 = vsub.f32 %v1657_v30, %v1944_v55  ;;  %v859_v53 = vsub.f32 %v1659_v32, %v1944_v55  ;;  %v861_v8 = vsub.f32 %v1667_v39, %v1944_v55 }
 0x251   :  { %v864_v28 = vsub.f32 %v1679_v51, %v1944_v55  ;;  %v865_v30 = vsub.f32 %v1684_v56, %v1944_v55  ;;  %v866_v32 = vsub.f32 %v1688_v60, %v1944_v55  ;;  %v868_v39 = vsub.f32 %v1696_v5, %v1944_v55 }
 0x252   :  { %v871_v51 = vsub.f32 %v1706_v15, %v1944_v55  ;;  %v872_v56 = vsub.f32 %v1708_v19, %v1944_v55  ;;  %v873_v60 = vsub.f32 %v1710_v22, %v1944_v55  ;;  %v875_v5 = vsub.f32 %v1714_v26, %v1944_v55 }
 0x253   :  { %v879_v15 = vsub.f32 %v1722_v41, %v1944_v55  ;;  %v880_v19 = vsub.f32 %v1724_v45, %v1944_v55  ;;  %v881_v22 = vsub.f32 %v1726_v49, %v1944_v55  ;;  %v883_v26 = vsub.f32 %v1730_v58, %v1944_v55 }
 0x254   :  { %v887_v41 = vsub.f32 %v1738_v11, %v1944_v55  ;;  %v888_v45 = vsub.f32 %v1740_v16, %v1944_v55  ;;  %v889_v49 = vsub.f32 %v1746_v18, %v1944_v55  ;;  %v891_v58 = vsub.f32 %v1758_v25, %v1944_v55 }
 0x255   :  { %v895_v16 = vsub.f32 %v1661_v34, %v1944_v55  ;;  %v896_v18 = vsub.f32 %v1665_v38, %v1944_v55  ;;  %v898_v25 = vsub.f32 %v1673_v46, %v1944_v55  ;;  %v2409_v34 = vld [vmem:[#allocation4_spill] sm:$0xff]  ;;  %v2410_v38 = vld [vmem:[#allocation5_spill] sm:$0xff]  ;;  %v2412_v46 = vld [vmem:[#allocation7_spill] sm:$0xff] }
 0x256   :  { %v903_v10 = vsub.f32 %v2410_v38, %v1944_v55  ;;  %v905_v17 = vsub.f32 %v2412_v46, %v1944_v55 }
 0x269   :  { %v1324_v6 = vpop.f32.mrf.mxu1 }
 0x26b   :  { %v1325_v13 = vpop.f32.mrf.mxu1 }
 0x26c   :  { %v1326_v20 = vadd.f32 %v1325_v13, %v1324_v6  ;;  %v902_v6 = vsub.f32 %v2409_v34, %v1944_v55 }
 0x28b   :  { %v843_v4 = vpop.f32.mrf.mxu1 }
 0x28c   :  { %v844_v14 = vadd.f32 %v1326_v20, %v843_v4  ;;  %v860_v4 = vsub.f32 %v1663_v35, %v1944_v55  ;;  %v867_v35 = vsub.f32 %v1692_v1, %v1944_v55  ;;  %v874_v1 = vsub.f32 %v1712_v24, %v1944_v55 }
 0x28d   :  { %v845_v23 = vpop.f32.mrf.mxu1  ;;  %v882_v24 = vsub.f32 %v1728_v54, %v1944_v55  ;;  %v890_v54 = vsub.f32 %v1752_v21, %v1944_v55  ;;  %v897_v21 = vsub.f32 %v1669_v42, %v1944_v55  ;;  %v2411_v42 = vld [vmem:[#allocation6_spill] sm:$0xff] }
 0x28e   :  { %v848_v0 = vmul.f32 0.0025510204, %v844_v14  ;;  %v878_v14 = vsub.f32 %v1720_v37, %v1944_v55  ;;  %v886_v37 = vsub.f32 %v1736_v7, %v1944_v55  ;;  %v894_v7 = vsub.f32 %v1776_v48, %v1944_v55  ;;  %v2408_v48 = vld [vmem:[#allocation3_spill] sm:$0xff] }
 0x28f   :  { %v901_v61 = vsub.f32 %v2408_v48, %v1944_v55  ;;  %v904_v13 = vsub.f32 %v2411_v42, %v1944_v55 }
 0x290   :  { %v850_v59 = vsub.f32 %v848_v0, %v849_v63  ;;  %v863_v63 = vsub.f32 %v1675_v47, %v1944_v55  ;;  %v870_v47 = vsub.f32 %v1702_v12, %v1944_v55  ;;  %v877_v12 = vsub.f32 %v1718_v33, %v1944_v55 }
 0x291   :  { %v885_v33 = vsub.f32 %v1734_v3, %v1944_v55  ;;  %v893_v3 = vsub.f32 %v1770_v40, %v1944_v55  ;;  %v2407_v40 = vld [vmem:[#allocation2_spill] sm:$0xff] }
 0x292   :  { %v851_v52 = vadd.f32 1e-05, %v850_v59  ;;  %v862_v59 = vsub.f32 %v1671_v43, %v1944_v55  ;;  %v869_v43 = vsub.f32 %v1700_v9, %v1944_v55  ;;  %v876_v9 = vsub.f32 %v1716_v29, %v1944_v55 }
 0x293   :  { %v884_v29 = vsub.f32 %v1732_v62, %v1944_v55  ;;  %v892_v62 = vsub.f32 %v1764_v31, %v1944_v55  ;;  %v899_v31 = vsub.f32 %v1677_v50, %v1944_v55  ;;  %v900_v57 = vsub.f32 %v2407_v40, %v1944_v55 }
 0x294   :  { %1465 = vrsqrt.f32 %v851_v52 }
 0x2a1   :  { %v1466_v11 = vpop.eup %1465 }
 0x2a2   :  { %v909_v2 = vrot.slane %v1466_v11, %v855_v27 }
 0x2a4   :  { %v910_v50 = vmul.f32 %v909_v2, %v857_v36  ;;  %v911_v20 = vmul.f32 %v909_v2, %v858_v44  ;;  %v912_v23 = vmul.f32 %v909_v2, %v859_v53  ;;  %v913_v0 = vmul.f32 %v909_v2, %v860_v4 }
 0x2a5   :  { %v914_v52 = vmul.f32 %v909_v2, %v861_v8  ;;  %v915_v40 = vmul.f32 %v909_v2, %v862_v59  ;;  %v916_v48 = vmul.f32 %v909_v2, %v863_v63  ;;  %v917_v27 = vmul.f32 %v909_v2, %v864_v28 }
 0x2a6   :  { %v918_v11 = vmul.f32 %v909_v2, %v865_v30  ;;  %v919_v34 = vmul.f32 %v909_v2, %v866_v32  ;;  %v920_v38 = vmul.f32 %v909_v2, %v867_v35  ;;  %v921_v42 = vmul.f32 %v909_v2, %v868_v39 }
 0x2a7   :  { %v922_v46 = vmul.f32 %v909_v2, %v869_v43  ;;  %v923_v55 = vmul.f32 %v909_v2, %v870_v47  ;;  %v924_v36 = vmul.f32 %v909_v2, %v871_v51  ;;  %v925_v44 = vmul.f32 %v909_v2, %v872_v56 }
 0x2a8   :  { %v926_v53 = vmul.f32 %v909_v2, %v873_v60  ;;  %v927_v4 = vmul.f32 %v909_v2, %v874_v1  ;;  %v928_v8 = vmul.f32 %v909_v2, %v875_v5  ;;  %v929_v59 = vmul.f32 %v909_v2, %v876_v9 }
 0x2a9   :  { %v930_v63 = vmul.f32 %v909_v2, %v877_v12  ;;  %v931_v28 = vmul.f32 %v909_v2, %v878_v14  ;;  %v932_v30 = vmul.f32 %v909_v2, %v879_v15  ;;  %v933_v32 = vmul.f32 %v909_v2, %v880_v19 }
 0x2aa   :  { %v934_v35 = vmul.f32 %v909_v2, %v881_v22  ;;  %v935_v39 = vmul.f32 %v909_v2, %v882_v24  ;;  %v936_v43 = vmul.f32 %v909_v2, %v883_v26  ;;  %v937_v47 = vmul.f32 %v909_v2, %v884_v29  ;;  %v1228_v26 = vld [vmem:[%s2392_s2] ss:$0 sm:$0xff] }
 0x2ab   :  { %v938_v51 = vmul.f32 %v909_v2, %v885_v33  ;;  %v939_v56 = vmul.f32 %v909_v2, %v886_v37  ;;  %v940_v60 = vmul.f32 %v909_v2, %v887_v41  ;;  %v941_v1 = vmul.f32 %v909_v2, %v888_v45 }
 0x2ac   :  { %v942_v5 = vmul.f32 %v909_v2, %v889_v49  ;;  %v943_v9 = vmul.f32 %v909_v2, %v890_v54  ;;  %v944_v12 = vmul.f32 %v909_v2, %v891_v58  ;;  %v945_v14 = vmul.f32 %v909_v2, %v892_v62 }
 0x2ad   :  { %v946_v15 = vmul.f32 %v909_v2, %v893_v3  ;;  %v947_v19 = vmul.f32 %v909_v2, %v894_v7  ;;  %v948_v22 = vmul.f32 %v909_v2, %v895_v16  ;;  %v949_v24 = vmul.f32 %v909_v2, %v896_v18 }
 0x2ae   :  { %v950_v29 = vmul.f32 %v909_v2, %v897_v21  ;;  %v951_v33 = vmul.f32 %v909_v2, %v898_v25  ;;  %v952_v37 = vmul.f32 %v909_v2, %v899_v31  ;;  %v953_v41 = vmul.f32 %v909_v2, %v900_v57 }
 0x2af   :  { %v954_v45 = vmul.f32 %v909_v2, %v901_v61  ;;  %v955_v49 = vmul.f32 %v909_v2, %v902_v6  ;;  %v956_v54 = vmul.f32 %v909_v2, %v903_v10  ;;  %v957_v58 = vmul.f32 %v909_v2, %v904_v13 }
 0x2b0   :  { %v958_v62 = vmul.f32 %v909_v2, %v905_v17  ;;  %v966_v3 = vmul.f32 %v1228_v26, %v910_v50  ;;  %v967_v7 = vmul.f32 %v1228_v26, %v911_v20  ;;  %v968_v16 = vmul.f32 %v1228_v26, %v912_v23 }
 0x2b1   :  { %v969_v18 = vmul.f32 %v1228_v26, %v913_v0  ;;  %v970_v21 = vmul.f32 %v1228_v26, %v914_v52  ;;  %v971_v25 = vmul.f32 %v1228_v26, %v915_v40  ;;  %v972_v31 = vmul.f32 %v1228_v26, %v916_v48 }
 0x2b2   :  { %v973_v57 = vmul.f32 %v1228_v26, %v917_v27  ;;  %v974_v61 = vmul.f32 %v1228_v26, %v918_v11  ;;  %v975_v6 = vmul.f32 %v1228_v26, %v919_v34  ;;  %v976_v10 = vmul.f32 %v1228_v26, %v920_v38 }
 0x2b3   :  { %v977_v13 = vmul.f32 %v1228_v26, %v921_v42  ;;  %v978_v2 = vmul.f32 %v1228_v26, %v922_v46  ;;  %v979_v17 = vmul.f32 %v1228_v26, %v923_v55  ;;  %v980_v50 = vmul.f32 %v1228_v26, %v924_v36 }
 0x2b4   :  { %v981_v20 = vmul.f32 %v1228_v26, %v925_v44  ;;  %v982_v23 = vmul.f32 %v1228_v26, %v926_v53  ;;  %v983_v0 = vmul.f32 %v1228_v26, %v927_v4  ;;  %v984_v52 = vmul.f32 %v1228_v26, %v928_v8 }
 0x2b5   :  { %v985_v40 = vmul.f32 %v1228_v26, %v929_v59  ;;  %v986_v48 = vmul.f32 %v1228_v26, %v930_v63  ;;  %v987_v27 = vmul.f32 %v1228_v26, %v931_v28  ;;  %v988_v11 = vmul.f32 %v1228_v26, %v932_v30 }
 0x2b6   :  { %v989_v34 = vmul.f32 %v1228_v26, %v933_v32  ;;  %v990_v38 = vmul.f32 %v1228_v26, %v934_v35  ;;  %v991_v42 = vmul.f32 %v1228_v26, %v935_v39  ;;  %v992_v46 = vmul.f32 %v1228_v26, %v936_v43  ;;  %v1229_v39 = vld [vmem:[%s2393_s3] ss:$0 sm:$0xff] }
 0x2b7   :  { %v993_v55 = vmul.f32 %v1228_v26, %v937_v47  ;;  %v994_v36 = vmul.f32 %v1228_v26, %v938_v51  ;;  %v995_v44 = vmul.f32 %v1228_v26, %v939_v56  ;;  %v996_v53 = vmul.f32 %v1228_v26, %v940_v60 }
 0x2b8   :  { %v997_v4 = vmul.f32 %v1228_v26, %v941_v1  ;;  %v998_v8 = vmul.f32 %v1228_v26, %v942_v5  ;;  %v999_v59 = vmul.f32 %v1228_v26, %v943_v9  ;;  %v1000_v63 = vmul.f32 %v1228_v26, %v944_v12 }
 0x2b9   :  { %v1001_v28 = vmul.f32 %v1228_v26, %v945_v14  ;;  %v1002_v30 = vmul.f32 %v1228_v26, %v946_v15  ;;  %v1003_v32 = vmul.f32 %v1228_v26, %v947_v19  ;;  %v1004_v35 = vmul.f32 %v1228_v26, %v948_v22 }
 0x2ba   :  { %v1005_v43 = vmul.f32 %v1228_v26, %v949_v24  ;;  %v1006_v47 = vmul.f32 %v1228_v26, %v950_v29  ;;  %v1007_v51 = vmul.f32 %v1228_v26, %v951_v33  ;;  %v1008_v56 = vmul.f32 %v1228_v26, %v952_v37 }
 0x2bb   :  { %v1009_v60 = vmul.f32 %v1228_v26, %v953_v41  ;;  %v1010_v1 = vmul.f32 %v1228_v26, %v954_v45  ;;  %v1011_v5 = vmul.f32 %v1228_v26, %v955_v49  ;;  %v1012_v9 = vmul.f32 %v1228_v26, %v956_v54 }
 0x2bc   :  { %v1013_v12 = vmul.f32 %v1228_v26, %v957_v58  ;;  %v1014_v14 = vmul.f32 %v1228_v26, %v958_v62  ;;  %v1022_v15 = vadd.f32 %v1229_v39, %v966_v3  ;;  %v2050_v19 = vadd.f32 %v1229_v39, %v967_v7 }
 0x2bd   :  { %v2052_v22 = vadd.f32 %v1229_v39, %v968_v16  ;;  %v2054_v24 = vadd.f32 %v1229_v39, %v969_v18  ;;  %v2056_v29 = vadd.f32 %v1229_v39, %v970_v21  ;;  %v2058_v33 = vadd.f32 %v1229_v39, %v971_v25 }
 0x2be   :  { %v2060_v37 = vadd.f32 %v1229_v39, %v972_v31  ;;  %v2062_v41 = vadd.f32 %v1229_v39, %v973_v57  ;;  %v2064_v45 = vadd.f32 %v1229_v39, %v974_v61  ;;  %v2066_v49 = vadd.f32 %v1229_v39, %v975_v6 }
 0x2bf   :  { %v2068_v26 = vadd.f32 %v1229_v39, %v976_v10  ;;  %v2070_v54 = vadd.f32 %v1229_v39, %v977_v13  ;;  %v2072_v58 = vadd.f32 %v1229_v39, %v978_v2  ;;  %v2074_v62 = vadd.f32 %v1229_v39, %v979_v17 }
 0x2c0   :  { %v2076_v3 = vadd.f32 %v1229_v39, %v980_v50  ;;  %v2078_v7 = vadd.f32 %v1229_v39, %v981_v20  ;;  %v2080_v16 = vadd.f32 %v1229_v39, %v982_v23  ;;  %v2082_v18 = vadd.f32 %v1229_v39, %v983_v0 }
 0x2c1   :  { %v2084_v21 = vadd.f32 %v1229_v39, %v984_v52  ;;  %v2086_v25 = vadd.f32 %v1229_v39, %v985_v40  ;;  %v2088_v31 = vadd.f32 %v1229_v39, %v986_v48  ;;  %v2090_v57 = vadd.f32 %v1229_v39, %v987_v27 }
 0x2c2   :  { %v2092_v61 = vadd.f32 %v1229_v39, %v988_v11  ;;  %v2094_v6 = vadd.f32 %v1229_v39, %v989_v34  ;;  %v2096_v10 = vadd.f32 %v1229_v39, %v990_v38  ;;  %v2098_v13 = vadd.f32 %v1229_v39, %v991_v42 }
 0x2c3   :  { %v2100_v2 = vadd.f32 %v1229_v39, %v992_v46  ;;  %v2102_v17 = vadd.f32 %v1229_v39, %v993_v55  ;;  %v2104_v50 = vadd.f32 %v1229_v39, %v994_v36  ;;  %v2106_v20 = vadd.f32 %v1229_v39, %v995_v44 }
 0x2c4   :  { %v2108_v23 = vadd.f32 %v1229_v39, %v996_v53  ;;  %v2110_v0 = vadd.f32 %v1229_v39, %v997_v4  ;;  %v2112_v52 = vadd.f32 %v1229_v39, %v998_v8  ;;  %v2114_v40 = vadd.f32 %v1229_v39, %v999_v59 }
 0x2c5   :  { %v2116_v48 = vadd.f32 %v1229_v39, %v1000_v63  ;;  %v2118_v27 = vadd.f32 %v1229_v39, %v1001_v28  ;;  %v2120_v11 = vadd.f32 %v1229_v39, %v1002_v30  ;;  %v2122_v34 = vadd.f32 %v1229_v39, %v1003_v32 }
 0x2c6   :  { %v2124_v38 = vadd.f32 %v1229_v39, %v1004_v35  ;;  %v2126_v42 = vadd.f32 %v1229_v39, %v1005_v43  ;;  %v2128_v46 = vadd.f32 %v1229_v39, %v1006_v47  ;;  %v2130_v55 = vadd.f32 %v1229_v39, %v1007_v51 }
 0x2c7   :  { %v2132_v36 = vadd.f32 %v1229_v39, %v1008_v56  ;;  %v2134_v44 = vadd.f32 %v1229_v39, %v1009_v60  ;;  %v2136_v53 = vadd.f32 %v1229_v39, %v1010_v1  ;;  %v2138_v4 = vadd.f32 %v1229_v39, %v1011_v5 }
 0x2c8   :  { %v2140_v8 = vadd.f32 %v1229_v39, %v1012_v9  ;;  %v2142_v59 = vadd.f32 %v1229_v39, %v1013_v12  ;;  %v2144_v63 = vadd.f32 %v1229_v39, %v1014_v14  ;;  %v1071_v28 = vmax.f32 %v1022_v15, 0.0 }
 0x2c9   :  { %v1072_v30 = vmax.f32 %v2050_v19, 0.0  ;;  %v1073_v32 = vmax.f32 %v2052_v22, 0.0  ;;  %v1074_v35 = vmax.f32 %v2054_v24, 0.0  ;;  %v1075_v43 = vmax.f32 %v2056_v29, 0.0 }
 0x2ca   :  { %v1076_v47 = vmax.f32 %v2058_v33, 0.0  ;;  %v1077_v51 = vmax.f32 %v2060_v37, 0.0  ;;  %v1078_v56 = vmax.f32 %v2062_v41, 0.0  ;;  %v1079_v60 = vmax.f32 %v2064_v45, 0.0  ;;  %1121 = vst.msk [vmem:[%s2394_s4] sm:$0xff] %vm1120_vm3, %v1071_v28 }
 0x2cb   :  { %v1080_v39 = vmax.f32 %v2066_v49, 0.0  ;;  %v1081_v1 = vmax.f32 %v2068_v26, 0.0  ;;  %v1082_v5 = vmax.f32 %v2070_v54, 0.0  ;;  %v1083_v9 = vmax.f32 %v2072_v58, 0.0  ;;  %1122 = vst.msk [vmem:[%s2394_s4 + $0x8] sm:$0xff] %vm1120_vm3, %v1072_v30  ;;  %1123 = vst.msk [vmem:[%s2394_s4 + $0x10] sm:$0xff] %vm1120_vm3, %v1073_v32 }
 0x2cc   :  { %1124 = vst.msk [vmem:[%s2394_s4 + $0x18] sm:$0xff] %vm1120_vm3, %v1074_v35  ;;  %1125 = vst.msk [vmem:[%s2394_s4 + $0x20] sm:$0xff] %vm1120_vm3, %v1075_v43  ;;  %v1084_v12 = vmax.f32 %v2074_v62, 0.0  ;;  %v1085_v14 = vmax.f32 %v2076_v3, 0.0  ;;  %v1086_v15 = vmax.f32 %v2078_v7, 0.0  ;;  %v1087_v19 = vmax.f32 %v2080_v16, 0.0 }
 0x2cd   :  { %1126 = vst.msk [vmem:[%s2394_s4 + $0x28] sm:$0xff] %vm1120_vm3, %v1076_v47  ;;  %1127 = vst.msk [vmem:[%s2394_s4 + $0x30] sm:$0xff] %vm1120_vm3, %v1077_v51  ;;  %v1088_v22 = vmax.f32 %v2082_v18, 0.0  ;;  %v1089_v24 = vmax.f32 %v2084_v21, 0.0  ;;  %v1090_v29 = vmax.f32 %v2086_v25, 0.0  ;;  %v1091_v33 = vmax.f32 %v2088_v31, 0.0 }
 0x2ce   :  { %1128 = vst.msk [vmem:[%s2394_s4 + $0x38] sm:$0xff] %vm1120_vm3, %v1078_v56  ;;  %1129 = vst.msk [vmem:[%s2394_s4 + $0x40] sm:$0xff] %vm1120_vm3, %v1079_v60  ;;  %v1092_v37 = vmax.f32 %v2090_v57, 0.0  ;;  %v1093_v41 = vmax.f32 %v2092_v61, 0.0  ;;  %v1094_v45 = vmax.f32 %v2094_v6, 0.0  ;;  %v1095_v49 = vmax.f32 %v2096_v10, 0.0 }
 0x2cf   :  { %1130 = vst.msk [vmem:[%s2394_s4 + $0x48] sm:$0xff] %vm1120_vm3, %v1080_v39  ;;  %1131 = vst.msk [vmem:[%s2394_s4 + $0x50] sm:$0xff] %vm1120_vm3, %v1081_v1  ;;  %v1096_v26 = vmax.f32 %v2098_v13, 0.0  ;;  %v1097_v54 = vmax.f32 %v2100_v2, 0.0  ;;  %v1098_v58 = vmax.f32 %v2102_v17, 0.0  ;;  %v1099_v62 = vmax.f32 %v2104_v50, 0.0 }
 0x2d0   :  { %1132 = vst.msk [vmem:[%s2394_s4 + $0x58] sm:$0xff] %vm1120_vm3, %v1082_v5  ;;  %1133 = vst.msk [vmem:[%s2394_s4 + $0x60] sm:$0xff] %vm1120_vm3, %v1083_v9  ;;  %v1100_v3 = vmax.f32 %v2106_v20, 0.0  ;;  %v1101_v7 = vmax.f32 %v2108_v23, 0.0  ;;  %v1102_v16 = vmax.f32 %v2110_v0, 0.0  ;;  %v1103_v18 = vmax.f32 %v2112_v52, 0.0 }
 0x2d1   :  { %1134 = vst.msk [vmem:[%s2394_s4 + $0x68] sm:$0xff] %vm1120_vm3, %v1084_v12  ;;  %1135 = vst.msk [vmem:[%s2394_s4 + $0x70] sm:$0xff] %vm1120_vm3, %v1085_v14  ;;  %v1104_v21 = vmax.f32 %v2114_v40, 0.0  ;;  %v1105_v25 = vmax.f32 %v2116_v48, 0.0  ;;  %v1106_v31 = vmax.f32 %v2118_v27, 0.0  ;;  %v1107_v57 = vmax.f32 %v2120_v11, 0.0 }
 0x2d2   :  { %1136 = vst.msk [vmem:[%s2394_s4 + $0x78] sm:$0xff] %vm1120_vm3, %v1086_v15  ;;  %1137 = vst.msk [vmem:[%s2394_s4 + $0x80] sm:$0xff] %vm1120_vm3, %v1087_v19  ;;  %v1108_v61 = vmax.f32 %v2122_v34, 0.0  ;;  %v1109_v6 = vmax.f32 %v2124_v38, 0.0  ;;  %v1110_v10 = vmax.f32 %v2126_v42, 0.0  ;;  %v1111_v13 = vmax.f32 %v2128_v46, 0.0 }
 0x2d3   :  { %1138 = vst.msk [vmem:[%s2394_s4 + $0x88] sm:$0xff] %vm1120_vm3, %v1088_v22  ;;  %1139 = vst.msk [vmem:[%s2394_s4 + $0x90] sm:$0xff] %vm1120_vm3, %v1089_v24  ;;  %v1112_v2 = vmax.f32 %v2130_v55, 0.0  ;;  %v1113_v17 = vmax.f32 %v2132_v36, 0.0  ;;  %v1114_v50 = vmax.f32 %v2134_v44, 0.0  ;;  %v1115_v20 = vmax.f32 %v2136_v53, 0.0 }
 0x2d4   :  { %1140 = vst.msk [vmem:[%s2394_s4 + $0x98] sm:$0xff] %vm1120_vm3, %v1090_v29  ;;  %1141 = vst.msk [vmem:[%s2394_s4 + $0xa0] sm:$0xff] %vm1120_vm3, %v1091_v33  ;;  %v1116_v23 = vmax.f32 %v2138_v4, 0.0  ;;  %v1117_v0 = vmax.f32 %v2140_v8, 0.0  ;;  %v1118_v52 = vmax.f32 %v2142_v59, 0.0  ;;  %v1119_v40 = vmax.f32 %v2144_v63, 0.0 }
 0x2d5   :  { %1142 = vst.msk [vmem:[%s2394_s4 + $0xa8] sm:$0xff] %vm1120_vm3, %v1092_v37  ;;  %1143 = vst.msk [vmem:[%s2394_s4 + $0xb0] sm:$0xff] %vm1120_vm3, %v1093_v41 }
 0x2d6   :  { %1144 = vst.msk [vmem:[%s2394_s4 + $0xb8] sm:$0xff] %vm1120_vm3, %v1094_v45  ;;  %1145 = vst.msk [vmem:[%s2394_s4 + $0xc0] sm:$0xff] %vm1120_vm3, %v1095_v49 }
 0x2d7   :  { %1146 = vst.msk [vmem:[%s2394_s4 + $0xc8] sm:$0xff] %vm1120_vm3, %v1096_v26  ;;  %1147 = vst.msk [vmem:[%s2394_s4 + $0xd0] sm:$0xff] %vm1120_vm3, %v1097_v54 }
 0x2d8   :  { %1148 = vst.msk [vmem:[%s2394_s4 + $0xd8] sm:$0xff] %vm1120_vm3, %v1098_v58  ;;  %1149 = vst.msk [vmem:[%s2394_s4 + $0xe0] sm:$0xff] %vm1120_vm3, %v1099_v62 }
 0x2d9   :  { %1150 = vst.msk [vmem:[%s2394_s4 + $0xe8] sm:$0xff] %vm1120_vm3, %v1100_v3  ;;  %1151 = vst.msk [vmem:[%s2394_s4 + $0xf0] sm:$0xff] %vm1120_vm3, %v1101_v7 }
 0x2da   :  { %1152 = vst.msk [vmem:[%s2394_s4 + $0xf8] sm:$0xff] %vm1120_vm3, %v1102_v16  ;;  %1153 = vst.msk [vmem:[%s2394_s4 + $0x100] sm:$0xff] %vm1120_vm3, %v1103_v18 }
 0x2db   :  { %1154 = vst.msk [vmem:[%s2394_s4 + $0x108] sm:$0xff] %vm1120_vm3, %v1104_v21  ;;  %1155 = vst.msk [vmem:[%s2394_s4 + $0x110] sm:$0xff] %vm1120_vm3, %v1105_v25 }
 0x2dc   :  { %1156 = vst.msk [vmem:[%s2394_s4 + $0x118] sm:$0xff] %vm1120_vm3, %v1106_v31  ;;  %1157 = vst.msk [vmem:[%s2394_s4 + $0x120] sm:$0xff] %vm1120_vm3, %v1107_v57 }
 0x2dd   :  { %1158 = vst.msk [vmem:[%s2394_s4 + $0x128] sm:$0xff] %vm1120_vm3, %v1108_v61  ;;  %1159 = vst.msk [vmem:[%s2394_s4 + $0x130] sm:$0xff] %vm1120_vm3, %v1109_v6 }
 0x2de   :  { %1160 = vst.msk [vmem:[%s2394_s4 + $0x138] sm:$0xff] %vm1120_vm3, %v1110_v10  ;;  %1161 = vst.msk [vmem:[%s2394_s4 + $0x140] sm:$0xff] %vm1120_vm3, %v1111_v13 }
 0x2df   :  { %1162 = vst.msk [vmem:[%s2394_s4 + $0x148] sm:$0xff] %vm1120_vm3, %v1112_v2  ;;  %1163 = vst.msk [vmem:[%s2394_s4 + $0x150] sm:$0xff] %vm1120_vm3, %v1113_v17 }
 0x2e0   :  { %1164 = vst.msk [vmem:[%s2394_s4 + $0x158] sm:$0xff] %vm1120_vm3, %v1114_v50  ;;  %1165 = vst.msk [vmem:[%s2394_s4 + $0x160] sm:$0xff] %vm1120_vm3, %v1115_v20 }
 0x2e1   :  { %1166 = vst.msk [vmem:[%s2394_s4 + $0x168] sm:$0xff] %vm1120_vm3, %v1116_v23  ;;  %1167 = vst.msk [vmem:[%s2394_s4 + $0x170] sm:$0xff] %vm1120_vm3, %v1117_v0 }
 0x2e2   :  { %1168 = vst.msk [vmem:[%s2394_s4 + $0x178] sm:$0xff] %vm1120_vm3, %v1118_v52  ;;  %1169 = vst.msk [vmem:[%s2394_s4 + $0x180] sm:$0xff] %vm1120_vm3, %v1119_v40 }

</bundles_post_ra>
